<compile_context>
chip_gen: v7x
topology: tpu7x:2x2x1
jax: 0.10.0
libtpu: 0.0.40
codegen_flags: <defaults>
</compile_context>

<pallas_src>
import jax
import jax.numpy as jnp
from jax import lax
from jax.experimental import pallas as pl
from jax.experimental.pallas import tpu as pltpu

_LANES = 128
_SUBLANES = 8
_TARGET_BUFFER_BYTES = 2 * 1024 * 1024     # per pipelined input buffer
_PIPELINE_VMEM_BUDGET = 24 * 1024 * 1024   # all double-buffered streams together


# --------------------------------------------------------------------------- #
# Kernels
# --------------------------------------------------------------------------- #
def _cross_packed_kernel(x0_ref, xi_ref, wmat_ref, b_ref, out_ref):
    """Lane-dense path (D < 128, 128 % D == 0): pack = 128 // D rows per vreg row.

    x0_ref, xi_ref, out_ref : (tile_rows, 128) tiles
    wmat_ref                : (128, 128) block-diagonal expanded weight (resident)
    b_ref                   : (1, 128) bias tiled `pack` times, f32 (resident)
    """
    xi = xi_ref[...].astype(jnp.float32)
    x0 = x0_ref[...].astype(jnp.float32)
    # s[r, j] = sum_{i in same D-lane segment as j} xi[r, i] * w[i % D]
    #         = per-logical-row scalar <X_i, w>, already broadcast over its segment.
    # The MXU has huge slack under the memory bound; HIGHEST precision keeps the
    # result bit-identical to the f32 VPU/XLA reference at zero extra cost.
    s = jnp.dot(xi, wmat_ref[...], preferred_element_type=jnp.float32,
                precision=lax.Precision.HIGHEST)
    out_ref[...] = (s * x0 + b_ref[...]).astype(out_ref.dtype)


def _cross_plain_kernel(x0_ref, xi_ref, w_ref, b_ref, out_ref):
    """Fallback path (D >= 128, 128 % D != 0, or B % pack != 0): VPU + lane reduce."""
    xi = xi_ref[...].astype(jnp.float32)
    x0 = x0_ref[...].astype(jnp.float32)
    s = jnp.sum(xi * w_ref[...], axis=-1, keepdims=True)   # (tile_rows, 1) f32
    out_ref[...] = (s * x0 + b_ref[...]).astype(out_ref.dtype)


# --------------------------------------------------------------------------- #
# Hardware probing & tile sizing
# --------------------------------------------------------------------------- #
def _hw_info():
    """Best-effort hardware probe; conservative defaults if the query fails."""
    vmem_phys = 64 * 1024 * 1024            # v7x has the smallest physical VMEM
    try:
        vmem_phys = int(pltpu.get_tpu_info().vmem_capacity_bytes)
    except Exception:
        pass
    multi_tc = False                        # v5e/v6e: 1 TensorCore per chip
    try:
        kind = jax.devices()[0].device_kind.lower()
        multi_tc = ("v7" in kind) or ("7x" in kind)
    except Exception:
        pass
    return vmem_phys, multi_tc


def _pick_tile_rows(n_rows, width, in_itemsize, out_itemsize, multi_tc):
    """Rows per grid step: ~2 MiB per input buffer, budget-clamped, 8-aligned."""
    # Bytes one physical row keeps resident in the pipeline (2 bufs, 2 in + 1 out).
    per_row = width * 2 * (2 * in_itemsize + out_itemsize)
    max_rows_budget = max(_SUBLANES,
                          (_PIPELINE_VMEM_BUDGET // per_row)
                          // _SUBLANES * _SUBLANES)
    rows_target = max(_SUBLANES,
                      (_TARGET_BUFFER_BYTES // (width * in_itemsize))
                      // _SUBLANES * _SUBLANES)
    tile_rows = min(rows_target, max_rows_budget)
    # On v7x keep the single "parallel" axis populated with >= 2 equal steps so
    # both TensorCores (each with its own HBM path) contribute.
    if multi_tc and n_rows > _SUBLANES:
        half = pl.cdiv(pl.cdiv(n_rows, 2), _SUBLANES) * _SUBLANES
        tile_rows = min(tile_rows, max(_SUBLANES, half))
    # Never bigger than the (sublane-rounded) whole array.
    tile_rows = min(tile_rows, pl.cdiv(n_rows, _SUBLANES) * _SUBLANES)
    return tile_rows


def _vmem_limit_bytes(tile_rows, width, itemsizes, resident_bytes, vmem_phys):
    """Explicit scoped-VMEM limit: actual usage + generous headroom, HW-capped."""
    usage = tile_rows * width * 2 * sum(itemsizes) + resident_bytes
    limit = int(usage * 1.5) + (4 << 20)
    limit = max(limit, 20 << 20)
    limit = min(limit, 48 << 20, (vmem_phys * 3) // 4)
    return int(limit)


# --------------------------------------------------------------------------- #
# Public wrapper
# --------------------------------------------------------------------------- #
def cross_interaction(x0: jax.Array, xi: jax.Array, w: jax.Array,
                      bias: jax.Array) -> jax.Array:
    """x0, xi: (B, D); w: (1, D) (= nn.Linear(D,1).weight); bias: (D,). -> (B, D)."""
    B, D = x0.shape
    assert xi.shape == (B, D)
    assert w.shape == (1, D)
    assert bias.shape == (D,)
    out_dtype = x0.dtype

    vmem_phys, multi_tc = _hw_info()

    pack = _LANES // D if (0 < D < _LANES and _LANES % D == 0) else 1
    # Lane-dense packing needs the row-major reshape to be exact.  For the rare
    # B % pack != 0 case we fall back to the plain path instead of paying a full
    # extra HBM pass for wrapper-side padding.
    packed = (pack > 1) and (B % pack == 0)

    i_x0 = jnp.dtype(x0.dtype).itemsize
    i_xi = jnp.dtype(xi.dtype).itemsize
    i_out = jnp.dtype(out_dtype).itemsize

    if packed:
        rows = B // pack
        width = _LANES
        # Free row-major reshape: every load/store becomes full-128-lane dense.
        x0v = x0.reshape(rows, _LANES)
        xiv = xi.reshape(rows, _LANES)
        # Block-diagonal expanded weight: wmat[i, j] = w[i % D] if seg(i)==seg(j).
        seg = jnp.arange(_LANES) // D
        wmat = ((seg[:, None] == seg[None, :]).astype(jnp.float32)
                * jnp.tile(w.reshape(D).astype(jnp.float32), pack)[:, None])
        bvec = jnp.tile(bias.astype(jnp.float32), pack).reshape(1, _LANES)
        kernel = _cross_packed_kernel
        params = (wmat, bvec)
        param_specs = [
            pl.BlockSpec((_LANES, _LANES), lambda i: (0, 0)),   # wmat (resident)
            pl.BlockSpec((1, _LANES), lambda i: (0, 0)),        # bias (resident)
        ]
        resident_bytes = (wmat.size + bvec.size) * 4
    else:
        rows = B
        width = D
        x0v, xiv = x0, xi
        wvec = w.astype(jnp.float32)
        bvec = bias.astype(jnp.float32).reshape(1, D)
        kernel = _cross_plain_kernel
        params = (wvec, bvec)
        param_specs = [
            pl.BlockSpec((1, D), lambda i: (0, 0)),             # W (resident)
            pl.BlockSpec((1, D), lambda i: (0, 0)),             # bias (resident)
        ]
        resident_bytes = (wvec.size + bvec.size) * 4

    tile_rows = _pick_tile_rows(rows, width, max(i_x0, i_xi), i_out, multi_tc)
    # Ragged last block: Pallas masks out-of-bounds stores, so no wrapper-side
    # jnp.pad of the inputs or out[:B] slice (each of which would add a full
    # extra HBM pass on a bandwidth-bound op).
    n_steps = pl.cdiv(rows, tile_rows)
    vmem_limit = _vmem_limit_bytes(tile_rows, width, (i_x0, i_xi, i_out),
                                   resident_bytes, vmem_phys)

    out = pl.pallas_call(
        kernel,
        out_shape=jax.ShapeDtypeStruct((rows, width), out_dtype),
        grid_spec=pltpu.PrefetchScalarGridSpec(
            num_scalar_prefetch=0,
            grid=(n_steps,),
            in_specs=[
                pl.BlockSpec((tile_rows, width), lambda i: (i, 0)),   # X_0
                pl.BlockSpec((tile_rows, width), lambda i: (i, 0)),   # X_i
            ] + param_specs,
            out_specs=pl.BlockSpec((tile_rows, width), lambda i: (i, 0)),
        ),
        # Single batch axis, "parallel" so v7x's two TensorCores can both run;
        # on v5e/v6e parallel-vs-arbitrary is a measured no-op.
        compiler_params=pltpu.CompilerParams(
            dimension_semantics=("parallel",),
            vmem_limit_bytes=vmem_limit,
        ),
    )(x0v, xiv, *params)

    if packed:
        out = out.reshape(B, D)
    return out


# --------------------------------------------------------------------------- #
# Self-test
# --------------------------------------------------------------------------- #
if __name__ == "__main__":
    key = jax.random.PRNGKey(0)

    def ref_fn(x0, xi, w, bias):
        x0f = x0.astype(jnp.float32)
        xif = xi.astype(jnp.float32)
        return (xif @ w.astype(jnp.float32).T) * x0f + bias.astype(jnp.float32)[None, :]

    # Small shapes consistent with the module; exercise packed / ragged /
    # fallback / bf16 paths.
    checks = [
        (16, 32, jnp.float32),    # packed path (pack=4), single tile
        (40, 32, jnp.float32),    # packed path, ragged last block (rows=10)
        (50, 32, jnp.float32),    # B % pack != 0 -> plain-path fallback, no pad
        (12, 256, jnp.float32),   # plain path (feature dim already lane dense)
        (24, 64, jnp.bfloat16),   # packed path (pack=2) with bf16 activations
    ]
    for (B, D, dt) in checks:
        k0, k1, k2, k3, key = jax.random.split(key, 5)
        x0 = jax.random.normal(k0, (B, D), dtype=jnp.float32).astype(dt)
        xi = jax.random.normal(k1, (B, D), dtype=jnp.float32).astype(dt)
        # Deterministic synthetic params (PyTorch init not replicated bit-for-bit).
        w = jax.random.normal(k2, (1, D), dtype=jnp.float32) * 0.1
        bias = jax.random.normal(k3, (D,), dtype=jnp.float32) * 0.01

        out = jax.block_until_ready(cross_interaction(x0, xi, w, bias))
        ref = ref_fn(x0, xi, w, bias)
        assert out.shape == (B, D) and out.dtype == dt
        tol = 1e-5 if dt == jnp.float32 else 2e-2
        assert jnp.allclose(out.astype(jnp.float32), ref, atol=tol, rtol=tol), \
            f"mismatch at {(B, D, dt)}"

    print("KERNEL_OK")
</pallas_src>

<mosaic_0001>
module attributes {stable_mosaic.version = 11 : i64} {
  func.func @_cross_packed_kernel(%arg0: i32, %arg1: memref<8x128xf32, #tpu.memory_space<vmem>>, %arg2: memref<8x128xf32, #tpu.memory_space<vmem>>, %arg3: memref<128x128xf32, #tpu.memory_space<vmem>>, %arg4: memref<1x128xf32, #tpu.memory_space<vmem>>, %arg5: memref<8x128xf32, #tpu.memory_space<vmem>>) attributes {dimension_semantics = [#tpu.dimension_semantics<parallel>], iteration_bounds = array<i64: 1>, scalar_prefetch = 0 : i64, scratch_operands = 0 : i64, tpu.core_type = #tpu.core_type<tc>, window_params = [{transform_indices = @transform_0, window_bounds = array<i64: 8, 128>}, {transform_indices = @transform_1, window_bounds = array<i64: 8, 128>}, {pipeline_mode = #tpu.pipeline_mode<synchronous>, transform_indices = @transform_2, window_bounds = array<i64: 128, 128>}, {pipeline_mode = #tpu.pipeline_mode<synchronous>, transform_indices = @transform_3, window_bounds = array<i64: 1, 128>}, {transform_indices = @transform_4, window_bounds = array<i64: 8, 128>}]} {
    %c0 = arith.constant 0 : index
    %c0_0 = arith.constant 0 : index
    %0 = vector.load %arg2[%c0, %c0_0] : memref<8x128xf32, #tpu.memory_space<vmem>>, vector<8x128xf32>
    %c0_1 = arith.constant 0 : index
    %c0_2 = arith.constant 0 : index
    %1 = vector.load %arg1[%c0_1, %c0_2] : memref<8x128xf32, #tpu.memory_space<vmem>>, vector<8x128xf32>
    %c0_3 = arith.constant 0 : index
    %c0_4 = arith.constant 0 : index
    %2 = vector.load %arg3[%c0_3, %c0_4] : memref<128x128xf32, #tpu.memory_space<vmem>>, vector<128x128xf32>
    %cst = arith.constant dense<0.000000e+00> : vector<8x128xf32>
    %3 = tpu.matmul %0, %2, %cst {dimension_numbers = #tpu.dot_dimension_numbers<[1], [0], [0], [1], [0, 0, 1, 1], [], []>, precision = #tpu.contract_precision<fp32>} : vector<8x128xf32>, vector<128x128xf32>, vector<8x128xf32> -> vector<8x128xf32>
    %4 = arith.mulf %3, %1 : vector<8x128xf32>
    %c0_5 = arith.constant 0 : index
    %c0_6 = arith.constant 0 : index
    %5 = vector.load %arg4[%c0_5, %c0_6] : memref<1x128xf32, #tpu.memory_space<vmem>>, vector<1x128xf32>
    %6 = vector.broadcast %5 : vector<1x128xf32> to vector<8x128xf32>
    %7 = arith.addf %4, %6 : vector<8x128xf32>
    %c0_7 = arith.constant 0 : index
    %c0_8 = arith.constant 0 : index
    %8 = vector.load %arg5[%c0_7, %c0_8] : memref<8x128xf32, #tpu.memory_space<vmem>>, vector<8x128xf32>
    tpu.vector_store %arg5[%c0_7, %c0_8], %7 {strides = array<i32>} : memref<8x128xf32, #tpu.memory_space<vmem>>, vector<8x128xf32>,
    return
  }
  func.func @transform_0(%arg0: i32) -> (i32, i32) {
    %c0_i32 = arith.constant 0 : i32
    %c0_i32_0 = arith.constant 0 : i32
    return %arg0, %c0_i32 : i32, i32
  }
  func.func @transform_1(%arg0: i32) -> (i32, i32) {
    %c0_i32 = arith.constant 0 : i32
    %c0_i32_0 = arith.constant 0 : i32
    return %arg0, %c0_i32 : i32, i32
  }
  func.func @transform_2(%arg0: i32) -> (i32, i32) {
    %c0_i32 = arith.constant 0 : i32
    %c0_i32_0 = arith.constant 0 : i32
    %c0_i32_1 = arith.constant 0 : i32
    return %c0_i32, %c0_i32_0 : i32, i32
  }
  func.func @transform_3(%arg0: i32) -> (i32, i32) {
    %c0_i32 = arith.constant 0 : i32
    %c0_i32_0 = arith.constant 0 : i32
    %c0_i32_1 = arith.constant 0 : i32
    return %c0_i32, %c0_i32_0 : i32, i32
  }
  func.func @transform_4(%arg0: i32) -> (i32, i32) {
    %c0_i32 = arith.constant 0 : i32
    %c0_i32_0 = arith.constant 0 : i32
    return %arg0, %c0_i32 : i32, i32
  }
}

</mosaic_0001>

<bundles_post_ra>
// kernel: tpu_custom_call.1
= control target key start
LH: loop header
LB: loop body
LE: loop exit
PB: predicated region body
PF: predicated region fallthrough
CT: control target
= control target key end

     0   :  { %9 = vsyncpa [#allocation3], 0  ;;  %s1667_s0 = inlined_call_operand.hbm [shape: f32[4,128], index: 0, kind: input, shape index: {}]   ;;  %s1668_s1 = inlined_call_operand.hbm [shape: f32[4,128], index: 1, kind: input, shape index: {}]   ;;  %s1669_s2 = inlined_call_operand.hbm [shape: f32[128,128], index: 2, kind: input, shape index: {}]   ;;  %s1670_s3 = inlined_call_operand.vmem [shape: f32[1,128], index: 3, kind: input, shape index: {}]   ;;  %s1671_s4 = inlined_call_operand.hbm [shape: f32[4,128], index: 4, kind: output, shape index: {}]  }
   0x1   :  { %10 = vsyncpa [#allocation6], 0 }
   0x2   :  { %11 = vsyncpa [#allocation4], 0 }
   0x3   :  { %16 = vsyncadd [#allocation3], 64  ;;  %s1317_s15 = smov [#allocation2]   ;;  %s1223_s19 = scalar_lea.hbm %s1667_s0, 64 }
   0x4   :  { %s17_s16 = sshll.u32 %s1317_s15, 4  ;;  %p1224_p0 = scmp.ne.s32.totalorder %s1667_s0, %s1223_s19  ;;  %s18_s16 = int_to_ptr.vmem [resolvable:$true] %s17_s16 }
   0x5   :  { %p1227_p1 = scmp.lt.u32.totalorder %s1223_s19, %s1667_s0 }
   0x7   :  { %p1229_p2 = pnand %p1227_p1, %p1224_p0 }
   0x9   :  { %1232 = shalt.err (!%p1229_p2)
}
   0xa   :  { %s1233_s24 = scalar_lea.vmem %s18_s16, 64  ;;  %s1237_s25 = scalar_lea.vmem %s18_s16, 128 }
   0xb   :  { %p1234_p3 = scmp.ne.s32.totalorder %s18_s16, %s1233_s24  ;;  %p1238_p4 = scmp.lt.s32.totalorder %s18_s16, %s18_s16 }
   0xc   :  { %p1239_p5 = scmp.lt.s32.totalorder %s1237_s25, %s1233_s24 }
   0xe   :  { %p1240_p6 = por %p1239_p5, %p1238_p4 }
  0x10   :  { %p1241_p7 = pnand %p1240_p6, %p1234_p3 }
  0x12   :  { %1244 = shalt.err (!%p1241_p7)
}
  0x13   :  { %s1318_s26 = smov 64   ;;  %s1319_s27 = smov 4  }
  0x14   :  { %23 = dma.hbm_to_vmem [thread:$0]  %s1667_s0, 64, %s18_s16, [#allocation3], %s1318_s26, %s1318_s26, %s1319_s27  }
  0x15   :  { %28 = vsyncadd [#allocation6], 64  ;;  %s1320_s30 = smov [#allocation5]   ;;  %s1321_s6 = smov [#allocation7]  }
  0x16   :  { %s29_s5 = sshll.u32 %s1320_s30, 4  ;;  %s41_s7 = sshll.u32 %s1321_s6, 4  ;;  %s30_s5 = int_to_ptr.vmem [resolvable:$true] %s29_s5  ;;  %s1368_s7 = int_to_ptr.vmem [resolvable:$true] %s41_s7 }
  0x17   :  { %s1245_s10 = scalar_lea.hbm %s1668_s1, 64 }
  0x18   :  { %p1246_p8 = scmp.ne.s32.totalorder %s1668_s1, %s1245_s10  ;;  %p1249_p9 = scmp.lt.u32.totalorder %s1245_s10, %s1668_s1 }
  0x1a   :  { %p1251_p10 = pnand %p1249_p9, %p1246_p8 }
  0x1c   :  { %1254 = shalt.err (!%p1251_p10)
}
  0x1d   :  { %s1255_s0 = scalar_lea.vmem %s30_s5, 64  ;;  %s1259_s15 = scalar_lea.vmem %s30_s5, 128 }
  0x1e   :  { %p1256_p11 = scmp.ne.s32.totalorder %s30_s5, %s1255_s0  ;;  %p1260_p12 = scmp.lt.s32.totalorder %s30_s5, %s30_s5 }
  0x1f   :  { %p1261_p13 = scmp.lt.s32.totalorder %s1259_s15, %s1255_s0 }
  0x21   :  { %p1262_p0 = por %p1261_p13, %p1260_p12 }
  0x23   :  { %p1263_p1 = pnand %p1262_p0, %p1256_p11 }
  0x25   :  { %1266 = shalt.err (!%p1263_p1)
}
  0x26   :  { %35 = dma.hbm_to_vmem [thread:$0]  %s1668_s1, 64, %s30_s5, [#allocation6], %s1318_s26, %s1318_s26, %s1319_s27  }
  0x27   :  { %s1267_s20 = scalar_lea.hbm %s1669_s2, 2048 }
  0x28   :  { %p1268_p2 = scmp.ne.s32.totalorder %s1669_s2, %s1267_s20  ;;  %p1271_p3 = scmp.lt.u32.totalorder %s1267_s20, %s1669_s2 }
  0x2a   :  { %p1273_p4 = pnand %p1271_p3, %p1268_p2 }
  0x2c   :  { %1276 = shalt.err (!%p1273_p4)
}
  0x2d   :  { %s1277_s25 = scalar_lea.vmem %s1368_s7, 2048  ;;  %p1282_p6 = scmp.lt.s32.totalorder %s1368_s7, %s1368_s7 }
  0x2e   :  { %p1278_p5 = scmp.ne.s32.totalorder %s1368_s7, %s1277_s25  ;;  %p1283_p7 = scmp.lt.s32.totalorder %s1277_s25, %s1277_s25 }
  0x30   :  { %p1284_p8 = por %p1283_p7, %p1282_p6 }
  0x32   :  { %p1285_p9 = pnand %p1284_p8, %p1278_p5 }
  0x34   :  { %1288 = shalt.err (!%p1285_p9)
}
  0x35   :  { %s1322_s1 = smov 128   ;;  %s1323_s28 = smov 8  }
  0x36   :  { %47 = dma.hbm_to_vmem [thread:$0]  %s1669_s2, 2048, %s1368_s7, [#allocation6], %s1322_s1, %s1322_s1, %s1323_s28  }
  0x37   :  { %1311 = dma.done.wait [#allocation3], 128  }
  0x38   :  { %1312 = vsyncadd [#allocation3], 4294967168 }
  0x39   :  { %1313 = dma.done.wait [#allocation6], 2176  }
  0x3a   :  { %1314 = vsyncadd [#allocation6], 4294965120  ;;  %v1324_v0 = vmov 0.0|0.0   ;;  %vm1325_vm0 = vmmov 0   ;;  %v1326_v1 = vmov 0.0   ;;  %v61_v2 = vld [vmem:[#allocation7] sm:$0xff] }
  0x3b   :  { %1059 = vmatprep.subr.bf16.mxu1 %v1324_v0  ;;  %1131 = vmatprep.subr.bf16.mxu0 %v1324_v0  ;;  %v62_v3 = vld [vmem:[#allocation7 + $0x8] sm:$0xff]  ;;  %v63_v4 = vld [vmem:[#allocation7 + $0x10] sm:$0xff]  ;;  %v78_v5 = vand.u32 4294901760, %v61_v2  ;;  %v64_v7 = vld [vmem:[#allocation7 + $0x18] sm:$0xff] }
  0x3c   :  { %881 = vmatprep.mubr.msk.f32.mxu1 %vm1325_vm0, %v1326_v1  ;;  %986 = vmatprep.mubr.msk.f32.mxu0 %vm1325_vm0, %v1326_v1  ;;  %v81_v6 = vand.u32 4294901760, %v62_v3  ;;  %v84_v8 = vand.u32 4294901760, %v63_v4  ;;  %v87_v9 = vand.u32 4294901760, %v64_v7  ;;  %v65_v10 = vld [vmem:[#allocation7 + $0x20] sm:$0xff]  ;;  %v66_v11 = vld [vmem:[#allocation7 + $0x28] sm:$0xff]  ;;  %v67_v16 = vld [vmem:[#allocation7 + $0x30] sm:$0xff] }
  0x3d   :  { %v90_v14 = vand.u32 4294901760, %v65_v10  ;;  %v93_v15 = vand.u32 4294901760, %v66_v11  ;;  %v68_v17 = vld [vmem:[#allocation7 + $0x38] sm:$0xff]  ;;  %v96_v19 = vand.u32 4294901760, %v67_v16  ;;  %v1422_v21 = vld [vmem:[#allocation7 + $0x40] sm:$0xff]  ;;  %v1424_v22 = vld [vmem:[#allocation7 + $0x48] sm:$0xff]  ;;  %v1438_v29 = vsub.f32 %v61_v2, %v78_v5 }
  0x3e   :  { %v1408_v12 = vpack.c.bf16 %v81_v6, %v78_v5  ;;  %v1412_v13 = vpack.c.bf16 %v87_v9, %v84_v8  ;;  %v99_v20 = vand.u32 4294901760, %v68_v17  ;;  %v102_v24 = vand.u32 4294901760, %v1422_v21  ;;  %v59_v26 = vld [vmem:[#allocation5] sm:$0xff]  ;;  %v1434_v27 = vld [vmem:[#allocation7 + $0x50] sm:$0xff]  ;;  %v1450_v35 = vld [vmem:[#allocation7 + $0x60] sm:$0xff] }
  0x3f   :  { %v1418_v18 = vpack.c.bf16 %v93_v15, %v90_v14  ;;  %v105_v25 = vand.u32 4294901760, %v1424_v22  ;;  %v1436_v28 = vld [vmem:[#allocation7 + $0x58] sm:$0xff]  ;;  %v1440_v30 = vand.u32 4294901760, %v59_v26  ;;  %v1442_v31 = vsub.f32 %v62_v3, %v81_v6  ;;  %v1454_v36 = vld [vmem:[#allocation7 + $0x68] sm:$0xff]  ;;  %v1473_v43 = vld [vmem:[#allocation7 + $0x70] sm:$0xff] }
  0x40   :  { %1061 = vmatpush3.bf16.msra.mxu1 %v1408_v12  ;;  %1133 = vmatpush3.bf16.msra.mxu0 %v1408_v12  ;;  %v1428_v23 = vpack.c.bf16 %v99_v20, %v96_v19  ;;  %v108_v33 = vand.u32 4294901760, %v1434_v27  ;;  %v111_v34 = vand.u32 4294901760, %v1436_v28  ;;  %v1456_v37 = vsub.f32 %v63_v4, %v84_v8  ;;  %v1475_v44 = vld [vmem:[#allocation7 + $0x78] sm:$0xff] }
  0x41   :  { %1062 = vmatprep.subr.bf16.mxu1 %v1324_v0  ;;  %1134 = vmatprep.subr.bf16.mxu0 %v1324_v0  ;;  %v1446_v32 = vpack.c.bf16 %v105_v25, %v102_v24  ;;  %v1458_v38 = vsub.f32 %v64_v7, %v87_v9  ;;  %v114_v39 = vand.u32 4294901760, %v1450_v35  ;;  %v1462_v40 = vsub.f32 %v59_v26, %v1440_v30 }
  0x42   :  { %v1470_v41 = vpack.c.bf16 %v111_v34, %v108_v33  ;;  %v117_v42 = vand.u32 4294901760, %v1454_v36  ;;  %v171_v45 = vand.u32 4294901760, %v1438_v29  ;;  %v178_v46 = vand.u32 4294901760, %v1442_v31 }
  0x43   :  { %v1481_v47 = vsub.f32 %v65_v10, %v90_v14  ;;  %v1483_v48 = vsub.f32 %v66_v11, %v93_v15  ;;  %v120_v49 = vand.u32 4294901760, %v1473_v43  ;;  %v123_v50 = vand.u32 4294901760, %v1475_v44 }
  0x44   :  { %1064 = vmatpush3.bf16.msra.mxu1 %v1412_v13  ;;  %1136 = vmatpush3.bf16.msra.mxu0 %v1412_v13  ;;  %v160_v51 = vand.u32 4294901760, %v1462_v40  ;;  %v185_v52 = vand.u32 4294901760, %v1456_v37  ;;  %v1495_v53 = vpack.c.bf16 %v117_v42, %v114_v39  ;;  %v172_v54 = vsub.f32 %v1438_v29, %v171_v45 }
  0x45   :  { %1065 = vmatprep.subr.bf16.mxu1 %v1324_v0  ;;  %1137 = vmatprep.subr.bf16.mxu0 %v1324_v0  ;;  %v179_v55 = vsub.f32 %v1442_v31, %v178_v46  ;;  %v192_v56 = vand.u32 4294901760, %v1458_v38  ;;  %v1502_v57 = vsub.f32 %v67_v16, %v96_v19  ;;  %v1504_v58 = vsub.f32 %v68_v17, %v99_v20 }
  0x46   :  { %v161_v59 = vsub.f32 %v1462_v40, %v160_v51  ;;  %v186_v60 = vsub.f32 %v1456_v37, %v185_v52  ;;  %v199_v61 = vand.u32 4294901760, %v1481_v47  ;;  %v206_v62 = vand.u32 4294901760, %v1483_v48 }
  0x47   :  { %v1516_v63 = vpack.c.bf16 %v123_v50, %v120_v49  ;;  %v173_v2 = vand.u32 4294901760, %v172_v54  ;;  %v180_v3 = vand.u32 4294901760, %v179_v55  ;;  %v193_v4 = vsub.f32 %v1458_v38, %v192_v56 }
  0x48   :  { %1067 = vmatpush3.bf16.msra.mxu1 %v1418_v18  ;;  %1139 = vmatpush3.bf16.msra.mxu0 %v1418_v18  ;;  %v1522_v5 = vsub.f32 %v1422_v21, %v102_v24  ;;  %v1525_v6 = vsub.f32 %v1424_v22, %v105_v25  ;;  %v1156_v7 = vpack.c.bf16 %v178_v46, %v171_v45  ;;  %v162_v8 = vand.u32 4294901760, %v161_v59 }
  0x49   :  { %1068 = vmatprep.subr.bf16.mxu1 %v1324_v0  ;;  %1140 = vmatprep.subr.bf16.mxu0 %v1324_v0  ;;  %v187_v9 = vand.u32 4294901760, %v186_v60  ;;  %v200_v10 = vsub.f32 %v1481_v47, %v199_v61  ;;  %v207_v11 = vsub.f32 %v1483_v48, %v206_v62  ;;  %v1084_v14 = vpack.c.bf16 %v180_v3, %v173_v2 }
  0x4a   :  { %v194_v15 = vand.u32 4294901760, %v193_v4  ;;  %v213_v16 = vand.u32 4294901760, %v1502_v57  ;;  %v220_v17 = vand.u32 4294901760, %v1504_v58  ;;  %v1538_v19 = vsub.f32 %v1434_v27, %v108_v33 }
  0x4b   :  { %v1543_v20 = vsub.f32 %v1436_v28, %v111_v34  ;;  %v1159_v21 = vpack.c.bf16 %v192_v56, %v185_v52  ;;  %v201_v22 = vand.u32 4294901760, %v200_v10  ;;  %v208_v24 = vand.u32 4294901760, %v207_v11 }
  0x4c   :  { %1070 = vmatpush3.bf16.msra.mxu1 %v1428_v23  ;;  %1142 = vmatpush3.bf16.msra.mxu0 %v1428_v23  ;;  %v227_v25 = vand.u32 4294901760, %v1522_v5  ;;  %v1087_v26 = vpack.c.bf16 %v194_v15, %v187_v9  ;;  %v214_v45 = vsub.f32 %v1502_v57, %v213_v16  ;;  %v221_v27 = vsub.f32 %v1504_v58, %v220_v17 }
  0x4d   :  { %1071 = vmatprep.subr.bf16.mxu1 %v1324_v0  ;;  %1143 = vmatprep.subr.bf16.mxu0 %v1324_v0  ;;  %v234_v33 = vand.u32 4294901760, %v1525_v6  ;;  %v1554_v28 = vsub.f32 %v1450_v35, %v114_v39  ;;  %v1559_v34 = vsub.f32 %v1454_v36, %v117_v42  ;;  %v1090_v46 = vpack.c.bf16 %v208_v24, %v201_v22 }
  0x4e   :  { %v228_v52 = vsub.f32 %v1522_v5, %v227_v25  ;;  %v241_v54 = vand.u32 4294901760, %v1538_v19  ;;  %v215_v35 = vand.u32 4294901760, %v214_v45  ;;  %v222_v39 = vand.u32 4294901760, %v221_v27 }
  0x4f   :  { %v235_v55 = vsub.f32 %v1525_v6, %v234_v33  ;;  %v248_v36 = vand.u32 4294901760, %v1543_v20  ;;  %v1574_v42 = vsub.f32 %v1473_v43, %v120_v49  ;;  %v1579_v56 = vsub.f32 %v1475_v44, %v123_v50 }
  0x50   :  { %1073 = vmatpush3.bf16.msra.mxu1 %v1446_v32  ;;  %1145 = vmatpush3.bf16.msra.mxu0 %v1446_v32  ;;  %v1165_v59 = vpack.c.bf16 %v220_v17, %v213_v16  ;;  %v229_v60 = vand.u32 4294901760, %v228_v52  ;;  %v1093_v2 = vpack.c.bf16 %v222_v39, %v215_v35  ;;  %v262_v43 = vand.u32 4294901760, %v1559_v34 }
  0x51   :  { %1074 = vmatprep.subr.bf16.mxu1 %v1324_v0  ;;  %1146 = vmatprep.subr.bf16.mxu0 %v1324_v0  ;;  %v236_v3 = vand.u32 4294901760, %v235_v55  ;;  %v249_v4 = vsub.f32 %v1543_v20, %v248_v36  ;;  %v1168_v44 = vpack.c.bf16 %v234_v33, %v227_v25  ;;  %v276_v11 = vand.u32 4294901760, %v1579_v56 }
  0x52   :  { %v263_v10 = vsub.f32 %v1559_v34, %v262_v43 }
  0x53   :  { %v250_v9 = vand.u32 4294901760, %v249_v4  ;;  %v277_v22 = vsub.f32 %v1579_v56, %v276_v11 }
  0x54   :  { %1076 = vmatpush3.bf16.msra.mxu1 %v1470_v41  ;;  %1148 = vmatpush3.bf16.msra.mxu0 %v1470_v41  ;;  %v264_v17 = vand.u32 4294901760, %v263_v10 }
  0x55   :  { %1077 = vmatprep.subr.bf16.mxu1 %v1324_v0  ;;  %1149 = vmatprep.subr.bf16.mxu0 %v1324_v0  ;;  %v278_v45 = vand.u32 4294901760, %v277_v22 }
  0x58   :  { %1079 = vmatpush3.bf16.msra.mxu1 %v1495_v53  ;;  %1151 = vmatpush3.bf16.msra.mxu0 %v1495_v53 }
  0x59   :  { %1080 = vmatprep.subr.bf16.mxu1 %v1324_v0  ;;  %1152 = vmatprep.subr.bf16.mxu0 %v1324_v0 }
  0x5c   :  { %1082 = vmatpush3.bf16.msra.mxu1 %v1516_v63  ;;  %1154 = vmatpush3.bf16.msra.mxu0 %v1516_v63 }
  0x5d   :  { %1083 = vmatprep.subr.bf16.mxu1 %v1324_v0  ;;  %1155 = vmatprep.subr.bf16.mxu0 %v1324_v0 }
  0x5f   :  { %882 = vmatmul.mubr.f32.vlgmr.msra.gmra.mrb[0].mxu1 %v162_v8  ;;  %987 = vmatmul.mubr.f32.vlgmr.msra.gmra.mrb[0].mxu0 %v160_v51  ;;  %v1162_v51 = vpack.c.bf16 %v206_v62, %v199_v61  ;;  %v242_v61 = vsub.f32 %v1538_v19, %v241_v54  ;;  %v255_v62 = vand.u32 4294901760, %v1554_v28  ;;  %v1096_v8 = vpack.c.bf16 %v236_v3, %v229_v60 }
  0x60   :  { %1085 = vmatpush3.bf16.msra.mxu1 %v1084_v14  ;;  %1157 = vmatpush3.bf16.msra.mxu0 %v1156_v7  ;;  %v269_v7 = vand.u32 4294901760, %v1574_v42  ;;  %v1171_v14 = vpack.c.bf16 %v248_v36, %v241_v54 }
  0x61   :  { %1086 = vmatprep.subr.bf16.mxu1 %v1324_v0  ;;  %1158 = vmatprep.subr.bf16.mxu0 %v1324_v0  ;;  %v243_v49 = vand.u32 4294901760, %v242_v61  ;;  %v256_v50 = vsub.f32 %v1554_v28, %v255_v62  ;;  %v1174_v25 = vpack.c.bf16 %v262_v43, %v255_v62 }
  0x62   :  { %916 = vmatprep.mubr.msk.f32.mxu1 %vm1325_vm0, %v1326_v1  ;;  %1021 = vmatprep.mubr.msk.f32.mxu0 %vm1325_vm0, %v1326_v1  ;;  %v1177_v33 = vpack.c.bf16 %v276_v11, %v269_v7 }
  0x63   :  { %v257_v15 = vand.u32 4294901760, %v256_v50  ;;  %v1099_v16 = vpack.c.bf16 %v250_v9, %v243_v49 }
  0x64   :  { %1088 = vmatpush3.bf16.msra.mxu1 %v1087_v26  ;;  %1160 = vmatpush3.bf16.msra.mxu0 %v1159_v21  ;;  %v270_v21 = vsub.f32 %v1574_v42, %v269_v7 }
  0x65   :  { %1089 = vmatprep.subr.bf16.mxu1 %v1324_v0  ;;  %1161 = vmatprep.subr.bf16.mxu0 %v1324_v0  ;;  %v1102_v24 = vpack.c.bf16 %v264_v17, %v257_v15 }
  0x66   :  { %v271_v26 = vand.u32 4294901760, %v270_v21 }
  0x68   :  { %1091 = vmatpush3.bf16.msra.mxu1 %v1090_v46  ;;  %1163 = vmatpush3.bf16.msra.mxu0 %v1162_v51  ;;  %v1105_v27 = vpack.c.bf16 %v278_v45, %v271_v26  ;;  %v1108_v46 = vpack.c.bf16 %v1442_v31, %v1438_v29  ;;  %v1111_v51 = vpack.c.bf16 %v1458_v38, %v1456_v37 }
  0x69   :  { %1092 = vmatprep.subr.bf16.mxu1 %v1324_v0  ;;  %1164 = vmatprep.subr.bf16.mxu0 %v1324_v0  ;;  %v1114_v29 = vpack.c.bf16 %v1483_v48, %v1481_v47  ;;  %v746_v48 = vld [vmem:[%s1670_s3] ss:$0 sm:$0xff] }
  0x6c   :  { %1094 = vmatpush3.bf16.msra.mxu1 %v1093_v2  ;;  %1166 = vmatpush3.bf16.msra.mxu0 %v1165_v59 }
  0x6d   :  { %1095 = vmatprep.subr.bf16.mxu1 %v1324_v0  ;;  %1167 = vmatprep.subr.bf16.mxu0 %v1324_v0 }
  0x70   :  { %1097 = vmatpush3.bf16.msra.mxu1 %v1096_v8  ;;  %1169 = vmatpush3.bf16.msra.mxu0 %v1168_v44 }
  0x71   :  { %1098 = vmatprep.subr.bf16.mxu1 %v1324_v0  ;;  %1170 = vmatprep.subr.bf16.mxu0 %v1324_v0 }
  0x74   :  { %1100 = vmatpush3.bf16.msra.mxu1 %v1099_v16  ;;  %1172 = vmatpush3.bf16.msra.mxu0 %v1171_v14 }
  0x75   :  { %1101 = vmatprep.subr.bf16.mxu1 %v1324_v0  ;;  %1173 = vmatprep.subr.bf16.mxu0 %v1324_v0 }
  0x78   :  { %1103 = vmatpush3.bf16.msra.mxu1 %v1102_v24  ;;  %1175 = vmatpush3.bf16.msra.mxu0 %v1174_v25 }
  0x79   :  { %1104 = vmatprep.subr.bf16.mxu1 %v1324_v0  ;;  %1176 = vmatprep.subr.bf16.mxu0 %v1324_v0 }
  0x7c   :  { %1106 = vmatpush3.bf16.msra.mxu1 %v1105_v27  ;;  %1178 = vmatpush3.bf16.msra.mxu0 %v1177_v33 }
  0x7d   :  { %1107 = vmatprep.subr.bf16.mxu1 %v1324_v0  ;;  %1179 = vmatprep.subr.bf16.mxu0 %v1324_v0 }
  0x7f   :  { %917 = vmatmul.mubr.f32.vlgmr.msra.gmra.mrb[0].mxu1 %v1440_v30  ;;  %1022 = vmatmul.mubr.f32.vlgmr.msra.gmra.mrb[0].mxu0 %v1440_v30 }
  0x80   :  { %1109 = vmatpush3.bf16.msra.mxu1 %v1108_v46  ;;  %1181 = vmatpush3.bf16.msra.mxu0 %v1408_v12  ;;  %v1117_v12 = vpack.c.bf16 %v1504_v58, %v1502_v57 }
  0x81   :  { %1110 = vmatprep.subr.bf16.mxu1 %v1324_v0  ;;  %1182 = vmatprep.subr.bf16.mxu0 %v1324_v0 }
  0x82   :  { %951 = vmatprep.mubr.msk.f32.mxu1 %vm1325_vm0, %v1326_v1  ;;  %1056 = vmatprep.mubr.msk.f32.mxu0 %vm1325_vm0, %v1326_v1  ;;  %v1120_v1 = vpack.c.bf16 %v1525_v6, %v1522_v5 }
  0x84   :  { %1112 = vmatpush3.bf16.msra.mxu1 %v1111_v51  ;;  %1184 = vmatpush3.bf16.msra.mxu0 %v1412_v13  ;;  %v1123_v13 = vpack.c.bf16 %v1543_v20, %v1538_v19 }
  0x85   :  { %1113 = vmatprep.subr.bf16.mxu1 %v1324_v0  ;;  %1185 = vmatprep.subr.bf16.mxu0 %v1324_v0 }
  0x88   :  { %1115 = vmatpush3.bf16.msra.mxu1 %v1114_v29  ;;  %1187 = vmatpush3.bf16.msra.mxu0 %v1418_v18  ;;  %v1126_v18 = vpack.c.bf16 %v1559_v34, %v1554_v28 }
  0x89   :  { %1116 = vmatprep.subr.bf16.mxu1 %v1324_v0  ;;  %1188 = vmatprep.subr.bf16.mxu0 %v1324_v0 }
  0x8c   :  { %1118 = vmatpush3.bf16.msra.mxu1 %v1117_v12  ;;  %1190 = vmatpush3.bf16.msra.mxu0 %v1428_v23  ;;  %v1129_v23 = vpack.c.bf16 %v1579_v56, %v1574_v42 }
  0x8d   :  { %1119 = vmatprep.subr.bf16.mxu1 %v1324_v0  ;;  %1191 = vmatprep.subr.bf16.mxu0 %v1324_v0 }
  0x90   :  { %1121 = vmatpush3.bf16.msra.mxu1 %v1120_v1  ;;  %1193 = vmatpush3.bf16.msra.mxu0 %v1446_v32  ;;  %v60_v32 = vld [vmem:[#allocation2] sm:$0xff] }
  0x91   :  { %1122 = vmatprep.subr.bf16.mxu1 %v1324_v0  ;;  %1194 = vmatprep.subr.bf16.mxu0 %v1324_v0 }
  0x94   :  { %1124 = vmatpush3.bf16.msra.mxu1 %v1123_v13  ;;  %1196 = vmatpush3.bf16.msra.mxu0 %v1470_v41 }
  0x95   :  { %1125 = vmatprep.subr.bf16.mxu1 %v1324_v0  ;;  %1197 = vmatprep.subr.bf16.mxu0 %v1324_v0 }
  0x98   :  { %1127 = vmatpush3.bf16.msra.mxu1 %v1126_v18  ;;  %1199 = vmatpush3.bf16.msra.mxu0 %v1495_v53 }
  0x99   :  { %1128 = vmatprep.subr.bf16.mxu1 %v1324_v0  ;;  %1200 = vmatprep.subr.bf16.mxu0 %v1324_v0 }
  0x9c   :  { %1130 = vmatpush3.bf16.msra.mxu1 %v1129_v23  ;;  %1202 = vmatpush3.bf16.msra.mxu0 %v1516_v63 }
  0x9f   :  { %952 = vmatmul.mubr.f32.vlgmr.msra.gmra.mrb[0].mxu1 %v1462_v40  ;;  %1057 = vmatmul.mubr.f32.vlgmr.msra.gmra.mrb[0].mxu0 %v1440_v30 }
 0x172   :  { %v419_v31 = vpop.f32.mrb[0].mxu1  ;;  %v714_v37 = vpop.f32.mrb[0].mxu0 }
 0x173   :  { %v1203_v38 = vadd.f32 %v714_v37, %v419_v31  ;;  %v953_v41 = vpop.f32.mrb[1].mxu1  ;;  %v1058_v47 = vpop.f32.mrb[1].mxu0 }
 0x175   :  { %v718_v53 = vmul.f32 %v1203_v38, %v60_v32 }
 0x177   :  { %v726_v57 = vadd.f32 %v746_v48, %v718_v53 }
 0x179   :  { %727 = vst [vmem:[#allocation8] sm:$0xff] %v726_v57 }
 0x17a   :  { %732 = vsyncadd [#allocation4], 64  ;;  %s1327_s6 = smov [#allocation8]  }
 0x17b   :  { %s733_s7 = sshll.u32 %s1327_s6, 4  ;;  %s734_s7 = int_to_ptr.vmem [resolvable:$true] %s733_s7 }
 0x17c   :  { %s1289_s8 = scalar_lea.vmem %s734_s7, 64  ;;  %s1293_s9 = scalar_lea.vmem %s734_s7, 128 }
 0x17d   :  { %p1290_p10 = scmp.ne.s32.totalorder %s734_s7, %s1289_s8  ;;  %p1294_p11 = scmp.lt.s32.totalorder %s734_s7, %s734_s7 }
 0x17e   :  { %p1295_p12 = scmp.lt.s32.totalorder %s1293_s9, %s1289_s8 }
 0x180   :  { %p1296_p13 = por %p1295_p12, %p1294_p11 }
 0x182   :  { %p1297_p0 = pnand %p1296_p13, %p1290_p10 }
 0x184   :  { %1300 = shalt.err (!%p1297_p0)
}
 0x185   :  { %s1301_s12 = scalar_lea.hbm %s1671_s4, 64 }
 0x186   :  { %p1302_p1 = scmp.ne.s32.totalorder %s1671_s4, %s1301_s12  ;;  %p1305_p2 = scmp.lt.u32.totalorder %s1301_s12, %s1671_s4 }
 0x188   :  { %p1307_p3 = pnand %p1305_p2, %p1302_p1 }
 0x18a   :  { %1310 = shalt.err (!%p1307_p3)
}
 0x18b   :  { %739 = dma.vmem_to_hbm [thread:$0]  %s734_s7, 64, %s1671_s4, [#allocation4], %s1318_s26, %s1318_s26, %s1319_s27  }
 0x18c   :  { %1315 = dma.done.wait [#allocation4], 128  }
 0x18d   :  { %1316 = vsyncadd [#allocation4], 4294967168 }
 0x18e   :  { %743 = vsyncpa [#allocation3], 1 }
 0x18f   :  { %744 = vsyncpa [#allocation6], 1 }
 0x190   :  { %745 = vsyncpa [#allocation4], 1 }

</bundles_post_ra>
